<compile_context>
chip_gen: v6e
topology: v6e:2x2x1
jax: 0.10.0
libtpu: 0.0.40
codegen_flags: <defaults>
</compile_context>

<pallas_src>
import functools

import jax
import jax.numpy as jnp
from jax.experimental import pallas as pl
from jax.experimental.pallas import tpu as pltpu

IN_FEATURES = 495
HIDDEN = 64
N_HIDDEN_LAYERS = 5


def _round_up(a, b):
    return ((a + b - 1) // b) * b


def deep_gravity_kernel(xT_ref, w_in_ref, b_in_ref, w_h_ref, b_h_ref,
                        w_out_ref, b_out_ref, o_ref):
    # xT_ref   : (495, TILE_N)  VMEM  -- features on sublanes, batch on lanes
    # w_in_ref : (64, 495)      VMEM
    # b_in_ref : (64, 1)        VMEM
    # w_h_ref  : (5, 64, 64)    VMEM  (stacked hidden layers)
    # b_h_ref  : (5, 64, 1)     VMEM
    # w_out_ref: (64, 1)        VMEM  (linear_out weight, transposed)
    # b_out_ref: (1,)           SMEM  (linear_out bias scalar)
    # o_ref    : (1, TILE_N)    VMEM  -- lane-dense output store
    xT = xT_ref[...]                                                  # (495, T)

    # linear_in: (64,495) @ (495,T) -> (64,T), MXU with f32 accumulation.
    h = jnp.dot(w_in_ref[...], xT, preferred_element_type=jnp.float32)
    h = h + b_in_ref[...]                                             # (64, T)

    r = h
    for l in range(w_h_ref.shape[0]):                                 # 5 layers, unrolled
        r = jnp.dot(w_h_ref[l], r, preferred_element_type=jnp.float32)
        r = jnp.maximum(r + b_h_ref[l], 0.0)                          # relu

    r = r + h                                                         # residual

    # linear_out (64 -> 1): keep off the MXU; elementwise mul + sublane reduce.
    y = jnp.sum(r * w_out_ref[...], axis=0, keepdims=True)            # (1, T)
    y = jnp.tanh(y + b_out_ref[0])
    o_ref[...] = y.astype(o_ref.dtype)


@functools.partial(jax.jit, static_argnames=("tile_n",))
def deep_gravity_forward(x, params, *, tile_n=512):
    """x: (N, 495) f32, params = (w_in, b_in, w_h, b_h, w_out, b_out) -> (N, 1) f32."""
    w_in, b_in, w_h, b_h, w_out, b_out = params
    n, d_in = x.shape
    hidden = w_in.shape[0]
    n_layers = w_h.shape[0]

    # Lane tile must be a multiple of 128; pad the batch so the grid divides evenly.
    tile_n = max(128, min(tile_n, _round_up(n, 128)))
    n_pad = _round_up(n, tile_n)
    if n_pad != n:
        x = jnp.pad(x, ((0, n_pad - n), (0, 0)))
    xT = x.T                                                          # (495, n_pad)

    grid = (n_pad // tile_n,)

    out = pl.pallas_call(
        deep_gravity_kernel,
        out_shape=jax.ShapeDtypeStruct((1, n_pad), x.dtype),
        grid=grid,
        in_specs=[
            pl.BlockSpec((d_in, tile_n), lambda i: (0, i)),             # xT tile
            pl.BlockSpec((hidden, d_in), lambda i: (0, 0)),             # W_in
            pl.BlockSpec((hidden, 1), lambda i: (0, 0)),                # b_in
            pl.BlockSpec((n_layers, hidden, hidden),
                         lambda i: (0, 0, 0)),                          # W_hidden
            pl.BlockSpec((n_layers, hidden, 1), lambda i: (0, 0, 0)),   # b_hidden
            pl.BlockSpec((hidden, 1), lambda i: (0, 0)),                # W_out^T
            pl.BlockSpec(memory_space=pltpu.MemorySpace.SMEM),          # b_out scalar
        ],
        out_specs=pl.BlockSpec((1, tile_n), lambda i: (0, i)),
        compiler_params=pltpu.CompilerParams(
            dimension_semantics=("parallel",)),
    )(xT, w_in, b_in[:, None], w_h, b_h[..., None], w_out.T, b_out)

    return out[0, :n].reshape(n, 1)


def reference_forward(x, params):
    # Pure-JAX mirror of the PyTorch module (f32, highest matmul precision).
    w_in, b_in, w_h, b_h, w_out, b_out = params
    hp = jax.lax.Precision.HIGHEST
    h = jnp.dot(x, w_in.T, precision=hp) + b_in
    r = h
    for l in range(w_h.shape[0]):
        r = jnp.maximum(jnp.dot(r, w_h[l].T, precision=hp) + b_h[l], 0.0)
    r = r + h
    return jnp.tanh(jnp.dot(r, w_out.T, precision=hp) + b_out)


if __name__ == "__main__":
    key = jax.random.PRNGKey(0)
    keys = jax.random.split(key, 16)

    batch = 8

    # Deterministic synthetic input.
    x = jax.random.normal(keys[0], (batch, IN_FEATURES), dtype=jnp.float32)

    # nn.Linear-style init: U(-1/sqrt(fan_in), 1/sqrt(fan_in)).
    def linear_init(kw, kb, fan_in, fan_out):
        bound = 1.0 / jnp.sqrt(jnp.float32(fan_in))
        w = jax.random.uniform(kw, (fan_out, fan_in), jnp.float32, -bound, bound)
        b = jax.random.uniform(kb, (fan_out,), jnp.float32, -bound, bound)
        return w, b

    w_in, b_in = linear_init(keys[1], keys[2], IN_FEATURES, HIDDEN)
    w_h_list, b_h_list = [], []
    for l in range(N_HIDDEN_LAYERS):
        w, b = linear_init(keys[3 + 2 * l], keys[4 + 2 * l], HIDDEN, HIDDEN)
        w_h_list.append(w)
        b_h_list.append(b)
    w_h = jnp.stack(w_h_list)            # (5, 64, 64)
    b_h = jnp.stack(b_h_list)            # (5, 64)
    w_out, b_out = linear_init(keys[13], keys[14], HIDDEN, 1)

    params = (w_in, b_in, w_h, b_h, w_out, b_out)

    out = deep_gravity_forward(x, params, tile_n=128)
    out = jax.block_until_ready(out)

    ref = reference_forward(x, params)
    assert out.shape == (batch, 1), out.shape
    assert jnp.allclose(out, ref, rtol=2e-2, atol=2e-2), "mismatch vs reference"

    print("KERNEL_OK")
</pallas_src>

<mosaic_0001>
module attributes {stable_mosaic.version = 11 : i64} {
  func.func @deep_gravity_kernel(%arg0: i32, %arg1: memref<495x128xf32, #tpu.memory_space<vmem>>, %arg2: memref<64x495xf32, #tpu.memory_space<vmem>>, %arg3: memref<64x1xf32, #tpu.memory_space<vmem>>, %arg4: memref<5x64x64xf32, #tpu.memory_space<vmem>>, %arg5: memref<5x64x1xf32, #tpu.memory_space<vmem>>, %arg6: memref<64x1xf32, #tpu.memory_space<vmem>>, %arg7: memref<1xf32, #tpu.memory_space<smem>>, %arg8: memref<1x128xf32, #tpu.memory_space<vmem>>) attributes {dimension_semantics = [#tpu.dimension_semantics<parallel>], iteration_bounds = array<i64: 1>, scalar_prefetch = 0 : i64, scratch_operands = 0 : i64, tpu.core_type = #tpu.core_type<tc>, window_params = [{transform_indices = @transform_0, window_bounds = array<i64: 495, 128>}, {pipeline_mode = #tpu.pipeline_mode<synchronous>, transform_indices = @transform_1, window_bounds = array<i64: 64, 495>}, {pipeline_mode = #tpu.pipeline_mode<synchronous>, transform_indices = @transform_2, window_bounds = array<i64: 64, 1>}, {pipeline_mode = #tpu.pipeline_mode<synchronous>, transform_indices = @transform_3, window_bounds = array<i64: 5, 64, 64>}, {pipeline_mode = #tpu.pipeline_mode<synchronous>, transform_indices = @transform_4, window_bounds = array<i64: 5, 64, 1>}, {pipeline_mode = #tpu.pipeline_mode<synchronous>, transform_indices = @transform_5, window_bounds = array<i64: 64, 1>}, {transform_indices = @transform_6, window_bounds = array<i64: 1>}, {transform_indices = @transform_7, window_bounds = array<i64: 1, 128>}]} {
    %c0 = arith.constant 0 : index
    %c0_0 = arith.constant 0 : index
    %0 = vector.load %arg1[%c0, %c0_0] : memref<495x128xf32, #tpu.memory_space<vmem>>, vector<495x128xf32>
    %c0_1 = arith.constant 0 : index
    %c0_2 = arith.constant 0 : index
    %1 = vector.load %arg2[%c0_1, %c0_2] : memref<64x495xf32, #tpu.memory_space<vmem>>, vector<64x495xf32>
    %cst = arith.constant dense<0.000000e+00> : vector<64x128xf32>
    %2 = tpu.matmul %1, %0, %cst {dimension_numbers = #tpu.dot_dimension_numbers<[1], [0], [0], [1], [0, 0, 1, 1], [], []>} : vector<64x495xf32>, vector<495x128xf32>, vector<64x128xf32> -> vector<64x128xf32>
    %c0_3 = arith.constant 0 : index
    %c0_4 = arith.constant 0 : index
    %3 = vector.load %arg3[%c0_3, %c0_4] : memref<64x1xf32, #tpu.memory_space<vmem>>, vector<64x1xf32>
    %4 = vector.broadcast %3 : vector<64x1xf32> to vector<64x128xf32>
    %5 = arith.addf %2, %4 : vector<64x128xf32>
    %c0_5 = arith.constant 0 : index
    %c0_6 = arith.constant 0 : index
    %c0_7 = arith.constant 0 : index
    %6 = vector.load %arg4[%c0_5, %c0_6, %c0_7] : memref<5x64x64xf32, #tpu.memory_space<vmem>>, vector<1x64x64xf32>
    %7 = vector.shape_cast %6 : vector<1x64x64xf32> to vector<64x64xf32>
    %cst_8 = arith.constant dense<0.000000e+00> : vector<64x128xf32>
    %8 = tpu.matmul %7, %5, %cst_8 {dimension_numbers = #tpu.dot_dimension_numbers<[1], [0], [0], [1], [0, 0, 1, 1], [], []>} : vector<64x64xf32>, vector<64x128xf32>, vector<64x128xf32> -> vector<64x128xf32>
    %c0_9 = arith.constant 0 : index
    %c0_10 = arith.constant 0 : index
    %c0_11 = arith.constant 0 : index
    %9 = vector.load %arg5[%c0_9, %c0_10, %c0_11] : memref<5x64x1xf32, #tpu.memory_space<vmem>>, vector<1x64x1xf32>
    %10 = vector.shape_cast %9 : vector<1x64x1xf32> to vector<64x1xf32>
    %11 = vector.broadcast %10 : vector<64x1xf32> to vector<64x128xf32>
    %12 = arith.addf %8, %11 : vector<64x128xf32>
    %cst_12 = arith.constant 0.000000e+00 : f32
    %13 = vector.broadcast %cst_12 : f32 to vector<64x128xf32>
    %14 = arith.maximumf %12, %13 : vector<64x128xf32>
    %c1 = arith.constant 1 : index
    %c0_13 = arith.constant 0 : index
    %c0_14 = arith.constant 0 : index
    %15 = vector.load %arg4[%c1, %c0_13, %c0_14] : memref<5x64x64xf32, #tpu.memory_space<vmem>>, vector<1x64x64xf32>
    %16 = vector.shape_cast %15 : vector<1x64x64xf32> to vector<64x64xf32>
    %cst_15 = arith.constant dense<0.000000e+00> : vector<64x128xf32>
    %17 = tpu.matmul %16, %14, %cst_15 {dimension_numbers = #tpu.dot_dimension_numbers<[1], [0], [0], [1], [0, 0, 1, 1], [], []>} : vector<64x64xf32>, vector<64x128xf32>, vector<64x128xf32> -> vector<64x128xf32>
    %c1_16 = arith.constant 1 : index
    %c0_17 = arith.constant 0 : index
    %c0_18 = arith.constant 0 : index
    %18 = vector.load %arg5[%c1_16, %c0_17, %c0_18] : memref<5x64x1xf32, #tpu.memory_space<vmem>>, vector<1x64x1xf32>
    %19 = vector.shape_cast %18 : vector<1x64x1xf32> to vector<64x1xf32>
    %20 = vector.broadcast %19 : vector<64x1xf32> to vector<64x128xf32>
    %21 = arith.addf %17, %20 : vector<64x128xf32>
    %cst_19 = arith.constant 0.000000e+00 : f32
    %22 = vector.broadcast %cst_19 : f32 to vector<64x128xf32>
    %23 = arith.maximumf %21, %22 : vector<64x128xf32>
    %c2 = arith.constant 2 : index
    %c0_20 = arith.constant 0 : index
    %c0_21 = arith.constant 0 : index
    %24 = vector.load %arg4[%c2, %c0_20, %c0_21] : memref<5x64x64xf32, #tpu.memory_space<vmem>>, vector<1x64x64xf32>
    %25 = vector.shape_cast %24 : vector<1x64x64xf32> to vector<64x64xf32>
    %cst_22 = arith.constant dense<0.000000e+00> : vector<64x128xf32>
    %26 = tpu.matmul %25, %23, %cst_22 {dimension_numbers = #tpu.dot_dimension_numbers<[1], [0], [0], [1], [0, 0, 1, 1], [], []>} : vector<64x64xf32>, vector<64x128xf32>, vector<64x128xf32> -> vector<64x128xf32>
    %c2_23 = arith.constant 2 : index
    %c0_24 = arith.constant 0 : index
    %c0_25 = arith.constant 0 : index
    %27 = vector.load %arg5[%c2_23, %c0_24, %c0_25] : memref<5x64x1xf32, #tpu.memory_space<vmem>>, vector<1x64x1xf32>
    %28 = vector.shape_cast %27 : vector<1x64x1xf32> to vector<64x1xf32>
    %29 = vector.broadcast %28 : vector<64x1xf32> to vector<64x128xf32>
    %30 = arith.addf %26, %29 : vector<64x128xf32>
    %cst_26 = arith.constant 0.000000e+00 : f32
    %31 = vector.broadcast %cst_26 : f32 to vector<64x128xf32>
    %32 = arith.maximumf %30, %31 : vector<64x128xf32>
    %c3 = arith.constant 3 : index
    %c0_27 = arith.constant 0 : index
    %c0_28 = arith.constant 0 : index
    %33 = vector.load %arg4[%c3, %c0_27, %c0_28] : memref<5x64x64xf32, #tpu.memory_space<vmem>>, vector<1x64x64xf32>
    %34 = vector.shape_cast %33 : vector<1x64x64xf32> to vector<64x64xf32>
    %cst_29 = arith.constant dense<0.000000e+00> : vector<64x128xf32>
    %35 = tpu.matmul %34, %32, %cst_29 {dimension_numbers = #tpu.dot_dimension_numbers<[1], [0], [0], [1], [0, 0, 1, 1], [], []>} : vector<64x64xf32>, vector<64x128xf32>, vector<64x128xf32> -> vector<64x128xf32>
    %c3_30 = arith.constant 3 : index
    %c0_31 = arith.constant 0 : index
    %c0_32 = arith.constant 0 : index
    %36 = vector.load %arg5[%c3_30, %c0_31, %c0_32] : memref<5x64x1xf32, #tpu.memory_space<vmem>>, vector<1x64x1xf32>
    %37 = vector.shape_cast %36 : vector<1x64x1xf32> to vector<64x1xf32>
    %38 = vector.broadcast %37 : vector<64x1xf32> to vector<64x128xf32>
    %39 = arith.addf %35, %38 : vector<64x128xf32>
    %cst_33 = arith.constant 0.000000e+00 : f32
    %40 = vector.broadcast %cst_33 : f32 to vector<64x128xf32>
    %41 = arith.maximumf %39, %40 : vector<64x128xf32>
    %c4 = arith.constant 4 : index
    %c0_34 = arith.constant 0 : index
    %c0_35 = arith.constant 0 : index
    %42 = vector.load %arg4[%c4, %c0_34, %c0_35] : memref<5x64x64xf32, #tpu.memory_space<vmem>>, vector<1x64x64xf32>
    %43 = vector.shape_cast %42 : vector<1x64x64xf32> to vector<64x64xf32>
    %cst_36 = arith.constant dense<0.000000e+00> : vector<64x128xf32>
    %44 = tpu.matmul %43, %41, %cst_36 {dimension_numbers = #tpu.dot_dimension_numbers<[1], [0], [0], [1], [0, 0, 1, 1], [], []>} : vector<64x64xf32>, vector<64x128xf32>, vector<64x128xf32> -> vector<64x128xf32>
    %c4_37 = arith.constant 4 : index
    %c0_38 = arith.constant 0 : index
    %c0_39 = arith.constant 0 : index
    %45 = vector.load %arg5[%c4_37, %c0_38, %c0_39] : memref<5x64x1xf32, #tpu.memory_space<vmem>>, vector<1x64x1xf32>
    %46 = vector.shape_cast %45 : vector<1x64x1xf32> to vector<64x1xf32>
    %47 = vector.broadcast %46 : vector<64x1xf32> to vector<64x128xf32>
    %48 = arith.addf %44, %47 : vector<64x128xf32>
    %cst_40 = arith.constant 0.000000e+00 : f32
    %49 = vector.broadcast %cst_40 : f32 to vector<64x128xf32>
    %50 = arith.maximumf %48, %49 : vector<64x128xf32>
    %51 = arith.addf %50, %5 : vector<64x128xf32>
    %c0_41 = arith.constant 0 : index
    %c0_42 = arith.constant 0 : index
    %52 = vector.load %arg6[%c0_41, %c0_42] : memref<64x1xf32, #tpu.memory_space<vmem>>, vector<64x1xf32>
    %53 = vector.broadcast %52 : vector<64x1xf32> to vector<64x128xf32>
    %54 = arith.mulf %51, %53 : vector<64x128xf32>
    %cst_43 = arith.constant dense<0.000000e+00> : vector<128xf32>
    %55 = vector.multi_reduction <add>, %54, %cst_43 [0] : vector<64x128xf32> to vector<128xf32>
    %56 = vector.shape_cast %55 : vector<128xf32> to vector<1x128xf32>
    %c0_44 = arith.constant 0 : index
    %57 = memref.load %arg7[%c0_44] : memref<1xf32, #tpu.memory_space<smem>>
    %58 = vector.broadcast %57 : f32 to vector<1x128xf32>
    %59 = arith.addf %56, %58 : vector<1x128xf32>
    %60 = math.tanh %59 : vector<1x128xf32>
    %c0_45 = arith.constant 0 : index
    %c0_46 = arith.constant 0 : index
    %61 = vector.load %arg8[%c0_45, %c0_46] : memref<1x128xf32, #tpu.memory_space<vmem>>, vector<1x128xf32>
    tpu.vector_store %arg8[%c0_45, %c0_46], %60 {strides = array<i32>} : memref<1x128xf32, #tpu.memory_space<vmem>>, vector<1x128xf32>,
    return
  }
  func.func @transform_0(%arg0: i32) -> (i32, i32) {
    %c0_i32 = arith.constant 0 : i32
    %c0_i32_0 = arith.constant 0 : i32
    return %c0_i32, %arg0 : i32, i32
  }
  func.func @transform_1(%arg0: i32) -> (i32, i32) {
    %c0_i32 = arith.constant 0 : i32
    %c0_i32_0 = arith.constant 0 : i32
    %c0_i32_1 = arith.constant 0 : i32
    return %c0_i32, %c0_i32_0 : i32, i32
  }
  func.func @transform_2(%arg0: i32) -> (i32, i32) {
    %c0_i32 = arith.constant 0 : i32
    %c0_i32_0 = arith.constant 0 : i32
    %c0_i32_1 = arith.constant 0 : i32
    return %c0_i32, %c0_i32_0 : i32, i32
  }
  func.func @transform_3(%arg0: i32) -> (i32, i32, i32) {
    %c0_i32 = arith.constant 0 : i32
    %c0_i32_0 = arith.constant 0 : i32
    %c0_i32_1 = arith.constant 0 : i32
    %c0_i32_2 = arith.constant 0 : i32
    return %c0_i32, %c0_i32_0, %c0_i32_1 : i32, i32, i32
  }
  func.func @transform_4(%arg0: i32) -> (i32, i32, i32) {
    %c0_i32 = arith.constant 0 : i32
    %c0_i32_0 = arith.constant 0 : i32
    %c0_i32_1 = arith.constant 0 : i32
    %c0_i32_2 = arith.constant 0 : i32
    return %c0_i32, %c0_i32_0, %c0_i32_1 : i32, i32, i32
  }
  func.func @transform_5(%arg0: i32) -> (i32, i32) {
    %c0_i32 = arith.constant 0 : i32
    %c0_i32_0 = arith.constant 0 : i32
    %c0_i32_1 = arith.constant 0 : i32
    return %c0_i32, %c0_i32_0 : i32, i32
  }
  func.func @transform_6(%arg0: i32) -> i32 {
    %c0_i32 = arith.constant 0 : i32
    %c0_i32_0 = arith.constant 0 : i32
    return %c0_i32 : i32
  }
  func.func @transform_7(%arg0: i32) -> (i32, i32) {
    %c0_i32 = arith.constant 0 : i32
    %c0_i32_0 = arith.constant 0 : i32
    return %c0_i32, %arg0 : i32, i32
  }
}

</mosaic_0001>

<bundles_post_ra>
// kernel: deep_gravity_forward.1
= control target key start
LH: loop header
LB: loop body
LE: loop exit
PB: predicated region body
PF: predicated region fallthrough
CT: control target
= control target key end

     0   :  { %v1879_v0 = vmov 0.0   ;;  %v1880_v3 = vmov 0   ;;  %vm194_vm0 = vcmask 1046528   ;;  %vm169_vm1 = vcmask 908288   ;;  %s2618_s0 = inlined_call_operand.vmem [shape: f32[495,128], index: 0, kind: input, shape index: {}]   ;;  %s2619_s2 = inlined_call_operand.vmem [shape: f32[64,1], index: 2, kind: input, shape index: {}]   ;;  %s2620_s1 = inlined_call_operand.vmem [shape: f32[64,495], index: 1, kind: input, shape index: {}]   ;;  %s2621_s4 = inlined_call_operand.vmem [shape: f32[5,64,1], index: 4, kind: input, shape index: {}]   ;;  %s2622_s5 = inlined_call_operand.vmem [shape: f32[64,1], index: 5, kind: input, shape index: {}]   ;;  %s2623_s3 = inlined_call_operand.vmem [shape: f32[5,64,64], index: 3, kind: input, shape index: {}]   ;;  %s2624_s6 = inlined_call_operand.<no memory space> [shape: f32[1], index: 6, kind: input, shape index: {}]   ;;  %s2625_s7 = inlined_call_operand.vmem [shape: f32[1,128], index: 7, kind: output, shape index: {}]  }
   0x1   :  { %303 = vmatprep.subr.mxu1 %v1879_v0  ;;  %v74_v1 = vld [vmem:[%s2618_s0 + $0x178] sm:$0xff]  ;;  %v73_v2 = vld [vmem:[%s2618_s0 + $0x170] sm:$0xff]  ;;  %1875 = vset.pattern.permute.xlu0 %v1880_v3  ;;  %v72_v4 = vld [vmem:[%s2618_s0 + $0x168] sm:$0xff]  ;;  %vm464_vm2 = vcmask 523264  }
   0x2   :  { %304 = vmatpush1.msra.mxu1 %v74_v1  ;;  %1876 = vset.pattern.permute.xlu1 %v1880_v3  ;;  %v58_v5 = vld [vmem:[%s2618_s0 + $0xf8] sm:$0xff]  ;;  %v71_v7 = vld [vmem:[%s2618_s0 + $0x160] sm:$0xff]  ;;  %v57_v8 = vld [vmem:[%s2618_s0 + $0xf0] sm:$0xff] }
   0x3   :  { %305 = vmatprep.subr.mxu1 %v1879_v0  ;;  %v42_v6 = vld [vmem:[%s2618_s0 + $0x78] sm:$0xff]  ;;  %1581 = vmatprep.subr.mxu0 %v58_v5  ;;  %v41_v9 = vld [vmem:[%s2618_s0 + $0x70] sm:$0xff]  ;;  %v56_v10 = vld [vmem:[%s2618_s0 + $0xe8] sm:$0xff] }
   0x4   :  { %306 = vmatpush1.msra.mxu1 %v73_v2  ;;  %1582 = vmatpush3.msra.mxu0 %v42_v6  ;;  %v70_v11 = vld [vmem:[%s2618_s0 + $0x158] sm:$0xff]  ;;  %v40_v12 = vld [vmem:[%s2618_s0 + $0x68] sm:$0xff]  ;;  %v55_v13 = vld [vmem:[%s2618_s0 + $0xe0] sm:$0xff] }
   0x5   :  { %307 = vmatprep.subr.mxu1 %v1879_v0  ;;  %1583 = vmatprep.subr.mxu0 %v57_v8  ;;  %v69_v14 = vld [vmem:[%s2618_s0 + $0x150] sm:$0xff]  ;;  %v39_v15 = vld [vmem:[%s2618_s0 + $0x60] sm:$0xff]  ;;  %v54_v16 = vld [vmem:[%s2618_s0 + $0xd8] sm:$0xff] }
   0x6   :  { %308 = vmatpush1.msra.mxu1 %v72_v4  ;;  %1584 = vmatpush3.msra.mxu0 %v41_v9  ;;  %v68_v17 = vld [vmem:[%s2618_s0 + $0x148] sm:$0xff]  ;;  %v38_v18 = vld [vmem:[%s2618_s0 + $0x58] sm:$0xff]  ;;  %v53_v19 = vld [vmem:[%s2618_s0 + $0xd0] sm:$0xff] }
   0x7   :  { %309 = vmatprep.subr.mxu1 %v1879_v0  ;;  %1585 = vmatprep.subr.mxu0 %v56_v10  ;;  %v67_v20 = vld [vmem:[%s2618_s0 + $0x140] sm:$0xff]  ;;  %v37_v21 = vld [vmem:[%s2618_s0 + $0x50] sm:$0xff]  ;;  %v52_v22 = vld [vmem:[%s2618_s0 + $0xc8] sm:$0xff] }
   0x8   :  { %310 = vmatpush1.msra.mxu1 %v71_v7  ;;  %1586 = vmatpush3.msra.mxu0 %v40_v12  ;;  %v66_v23 = vld [vmem:[%s2618_s0 + $0x138] sm:$0xff]  ;;  %v36_v24 = vld [vmem:[%s2618_s0 + $0x48] sm:$0xff]  ;;  %v51_v25 = vld [vmem:[%s2618_s0 + $0xc0] sm:$0xff] }
   0x9   :  { %311 = vmatprep.subr.mxu1 %v1879_v0  ;;  %1587 = vmatprep.subr.mxu0 %v55_v13  ;;  %v65_v26 = vld [vmem:[%s2618_s0 + $0x130] sm:$0xff]  ;;  %v35_v27 = vld [vmem:[%s2618_s0 + $0x40] sm:$0xff]  ;;  %v50_v28 = vld [vmem:[%s2618_s0 + $0xb8] sm:$0xff] }
   0xa   :  { %312 = vmatpush1.msra.mxu1 %v70_v11  ;;  %1588 = vmatpush3.msra.mxu0 %v39_v15  ;;  %v64_v29 = vld [vmem:[%s2618_s0 + $0x128] sm:$0xff]  ;;  %v34_v30 = vld [vmem:[%s2618_s0 + $0x38] sm:$0xff]  ;;  %v49_v31 = vld [vmem:[%s2618_s0 + $0xb0] sm:$0xff] }
   0xb   :  { %313 = vmatprep.subr.mxu1 %v1879_v0  ;;  %1589 = vmatprep.subr.mxu0 %v54_v16  ;;  %v63_v32 = vld [vmem:[%s2618_s0 + $0x120] sm:$0xff]  ;;  %v33_v33 = vld [vmem:[%s2618_s0 + $0x30] sm:$0xff]  ;;  %v48_v34 = vld [vmem:[%s2618_s0 + $0xa8] sm:$0xff] }
   0xc   :  { %314 = vmatpush1.msra.mxu1 %v69_v14  ;;  %1590 = vmatpush3.msra.mxu0 %v38_v18  ;;  %v62_v35 = vld [vmem:[%s2618_s0 + $0x118] sm:$0xff]  ;;  %v32_v36 = vld [vmem:[%s2618_s0 + $0x28] sm:$0xff]  ;;  %v47_v37 = vld [vmem:[%s2618_s0 + $0xa0] sm:$0xff] }
   0xd   :  { %315 = vmatprep.subr.mxu1 %v1879_v0  ;;  %1591 = vmatprep.subr.mxu0 %v53_v19  ;;  %v61_v38 = vld [vmem:[%s2618_s0 + $0x110] sm:$0xff]  ;;  %v31_v39 = vld [vmem:[%s2618_s0 + $0x20] sm:$0xff]  ;;  %v46_v40 = vld [vmem:[%s2618_s0 + $0x98] sm:$0xff] }
   0xe   :  { %316 = vmatpush1.msra.mxu1 %v68_v17  ;;  %1592 = vmatpush3.msra.mxu0 %v37_v21  ;;  %v60_v41 = vld [vmem:[%s2618_s0 + $0x108] sm:$0xff]  ;;  %v128_v42 = vld [vmem:[%s2619_s2 + $0x38] sm:$0xff]  ;;  %v59_v44 = vld [vmem:[%s2618_s0 + $0x100] sm:$0xff] }
   0xf   :  { %317 = vmatprep.subr.mxu1 %v1879_v0  ;;  %1593 = vmatprep.subr.mxu0 %v52_v22  ;;  %v30_v43 = vld [vmem:[%s2618_s0 + $0x18] sm:$0xff]  ;;  %v45_v45 = vld [vmem:[%s2618_s0 + $0x90] sm:$0xff]  ;;  %v88_v47 = vld [vmem:[%s2618_s0 + $0x1e8] sm:$0x7f] }
  0x10   :  { %318 = vmatpush1.msra.mxu1 %v67_v20  ;;  %1594 = vmatpush3.msra.mxu0 %v36_v24  ;;  %v29_v46 = vld [vmem:[%s2618_s0 + $0x10] sm:$0xff]  ;;  %v44_v48 = vld [vmem:[%s2618_s0 + $0x88] sm:$0xff]  ;;  %v87_v50 = vld [vmem:[%s2618_s0 + $0x1e0] sm:$0xff] }
  0x11   :  { %319 = vmatprep.subr.mxu1 %v1879_v0  ;;  %1595 = vmatprep.subr.mxu0 %v51_v25  ;;  %v127_v49 = vld [vmem:[%s2619_s2 + $0x30] sm:$0xff]  ;;  %v126_v51 = vld [vmem:[%s2619_s2 + $0x28] sm:$0xff]  ;;  %v86_v53 = vld [vmem:[%s2618_s0 + $0x1d8] sm:$0xff] }
  0x12   :  { %320 = vmatpush1.msra.mxu1 %v66_v23  ;;  %1596 = vmatpush3.msra.mxu0 %v35_v27  ;;  %v28_v52 = vld [vmem:[%s2618_s0 + $0x8] sm:$0xff]  ;;  %v43_v54 = vld [vmem:[%s2618_s0 + $0x80] sm:$0xff]  ;;  %v85_v56 = vld [vmem:[%s2618_s0 + $0x1d0] sm:$0xff] }
  0x13   :  { %321 = vmatprep.subr.mxu1 %v1879_v0  ;;  %1597 = vmatprep.subr.mxu0 %v50_v28  ;;  %v27_v55 = vld [vmem:[%s2618_s0] sm:$0xff]  ;;  %v90_v57 = vld [vmem:[%s2620_s1 + $0x8] sm:$0xff]  ;;  %v124_v61 = vld [vmem:[%s2619_s2 + $0x18] sm:$0xff] }
  0x14   :  { %322 = vmatpush1.msra.mxu1 %v65_v26  ;;  %1598 = vmatpush3.msra.mxu0 %v34_v30  ;;  %v89_v58 = vld [vmem:[%s2620_s1] sm:$0xff]  ;;  %v84_v59 = vld [vmem:[%s2618_s0 + $0x1c8] sm:$0xff]  ;;  %v82_v2 = vld [vmem:[%s2618_s0 + $0x1b8] sm:$0xff] }
  0x15   :  { %323 = vmatprep.subr.mxu1 %v1879_v0  ;;  %1599 = vmatprep.subr.mxu0 %v49_v31  ;;  %v125_v60 = vld [vmem:[%s2619_s2 + $0x20] sm:$0xff]  ;;  %v94_v63 = vld [vmem:[%s2620_s1 + $0x28] sm:$0xff]  ;;  %v123_v3 = vld [vmem:[%s2619_s2 + $0x10] sm:$0xff] }
  0x16   :  { %324 = vmatpush1.msra.mxu1 %v64_v29  ;;  %1600 = vmatpush3.msra.mxu0 %v33_v33  ;;  %v83_v62 = vld [vmem:[%s2618_s0 + $0x1c0] sm:$0xff]  ;;  %v122_v4 = vld [vmem:[%s2619_s2 + $0x8] sm:$0xff]  ;;  %v81_v5 = vld [vmem:[%s2618_s0 + $0x1b0] sm:$0xff] }
  0x17   :  { %325 = vmatprep.subr.mxu1 %v1879_v0  ;;  %1601 = vmatprep.subr.mxu0 %v48_v34  ;;  %v93_v1 = vld [vmem:[%s2620_s1 + $0x20] sm:$0xff]  ;;  %v98_v6 = vld [vmem:[%s2620_s1 + $0x48] sm:$0xff]  ;;  %v92_v7 = vld [vmem:[%s2620_s1 + $0x18] sm:$0xff] }
  0x18   :  { %326 = vmatpush1.msra.mxu1 %v63_v32  ;;  %1602 = vmatpush3.msra.mxu0 %v32_v36  ;;  %v80_v8 = vld [vmem:[%s2618_s0 + $0x1a8] sm:$0xff]  ;;  %v97_v9 = vld [vmem:[%s2620_s1 + $0x40] sm:$0xff]  ;;  %v423_v10 = vld [vmem:[%s2621_s4 + $0x38] sm:$0xff] }
  0x19   :  { %327 = vmatprep.subr.mxu1 %v1879_v0  ;;  %1603 = vmatprep.subr.mxu0 %v47_v37  ;;  %v79_v11 = vld [vmem:[%s2618_s0 + $0x1a0] sm:$0xff]  ;;  %v102_v13 = vld [vmem:[%s2620_s1 + $0x68] sm:$0xff]  ;;  %v78_v14 = vld [vmem:[%s2618_s0 + $0x198] sm:$0xff] }
  0x1a   :  { %328 = vmatpush1.msra.mxu1 %v62_v35  ;;  %1604 = vmatpush3.msra.mxu0 %v31_v39  ;;  %v121_v12 = vld [vmem:[%s2619_s2] sm:$0xff]  ;;  %v421_v16 = vld [vmem:[%s2621_s4 + $0x28] sm:$0xff]  ;;  %v77_v17 = vld [vmem:[%s2618_s0 + $0x190] sm:$0xff] }
  0x1b   :  { %329 = vmatprep.subr.mxu1 %v1879_v0  ;;  %1605 = vmatprep.subr.mxu0 %v46_v40  ;;  %v101_v15 = vld [vmem:[%s2620_s1 + $0x60] sm:$0xff]  ;;  %v422_v18 = vld [vmem:[%s2621_s4 + $0x30] sm:$0xff]  ;;  %v106_v19 = vld [vmem:[%s2620_s1 + $0x88] sm:$0xff] }
  0x1c   :  { %330 = vmatpush1.msra.mxu1 %v61_v38  ;;  %166 = vperm.xlu0 %1875, %v128_v42   ;;  %v76_v20 = vld [vmem:[%s2618_s0 + $0x188] sm:$0xff]  ;;  %v105_v21 = vld [vmem:[%s2620_s1 + $0x80] sm:$0xff]  ;;  %v419_v22 = vld [vmem:[%s2621_s4 + $0x18] sm:$0xff] }
  0x1d   :  { %331 = vmatprep.subr.mxu1 %v1879_v0  ;;  %1606 = vmatpush3.msra.mxu0 %v30_v43  ;;  %v75_v23 = vld [vmem:[%s2618_s0 + $0x180] sm:$0xff]  ;;  %v91_v25 = vld [vmem:[%s2620_s1 + $0x10] sm:$0xff]  ;;  %v110_v26 = vld [vmem:[%s2620_s1 + $0xa8] sm:$0xff] }
  0x1e   :  { %332 = vmatpush1.msra.mxu1 %v60_v41  ;;  %1607 = vmatprep.subr.mxu0 %v45_v45  ;;  %v420_v24 = vld [vmem:[%s2621_s4 + $0x20] sm:$0xff]  ;;  %v96_v27 = vld [vmem:[%s2620_s1 + $0x38] sm:$0xff]  ;;  %v417_v29 = vld [vmem:[%s2621_s4 + $0x8] sm:$0xff] }
  0x1f   :  { %333 = vmatprep.subr.mxu1 %v1879_v0  ;;  %1608 = vmatpush3.msra.mxu0 %v29_v46  ;;  %v109_v28 = vld [vmem:[%s2620_s1 + $0xa0] sm:$0xff]  ;;  %v114_v30 = vld [vmem:[%s2620_s1 + $0xc8] sm:$0xff]  ;;  %v95_v31 = vld [vmem:[%s2620_s1 + $0x30] sm:$0xff] }
  0x20   :  { %334 = vmatpush1.msra.mxu1 %v59_v44  ;;  %1609 = vmatprep.subr.mxu0 %v44_v48  ;;  %v100_v32 = vld [vmem:[%s2620_s1 + $0x58] sm:$0xff]  ;;  %v113_v33 = vld [vmem:[%s2620_s1 + $0xc0] sm:$0xff]  ;;  %v118_v35 = vld [vmem:[%s2620_s1 + $0xe8] sm:$0xff] }
  0x21   :  { %339 = vmatprep.subr.mxu1 %v1879_v0  ;;  %161 = vperm.xlu0 %1875, %v127_v49   ;;  %v1500_v34 = vld [vmem:[%s2621_s4 + $0x78] sm:$0xff]  ;;  %v416_v36 = vld [vmem:[%s2621_s4] sm:$0xff]  ;;  %v99_v37 = vld [vmem:[%s2620_s1 + $0x50] sm:$0xff] }
  0x22   :  { %1468 = vmatpush2.msk.msra.mxu1 %vm194_vm0, %v88_v47  ;;  %156 = vperm.xlu1 %1876, %v126_v51   ;;  %v104_v38 = vld [vmem:[%s2620_s1 + $0x78] sm:$0xff]  ;;  %v117_v39 = vld [vmem:[%s2620_s1 + $0xe0] sm:$0xff]  ;;  %v1498_v40 = vld [vmem:[%s2621_s4 + $0x68] sm:$0xff] }
  0x23   :  { %341 = vmatprep.subr.mxu1 %v1879_v0  ;;  %1610 = vmatpush3.msra.mxu0 %v28_v52  ;;  %v1499_v41 = vld [vmem:[%s2621_s4 + $0x70] sm:$0xff]  ;;  %v108_v43 = vld [vmem:[%s2620_s1 + $0x98] sm:$0xff]  ;;  %v1497_v45 = vld [vmem:[%s2621_s4 + $0x60] sm:$0xff] }
  0x24   :  { %342 = vmatpush2.msra.mxu1 %v87_v50  ;;  %1611 = vmatprep.subr.mxu0 %v43_v54  ;;  %v103_v42 = vld [vmem:[%s2620_s1 + $0x70] sm:$0xff]  ;;  %v1496_v44 = vld [vmem:[%s2621_s4 + $0x58] sm:$0xff]  ;;  %v1494_v48 = vld [vmem:[%s2621_s4 + $0x48] sm:$0xff] }
  0x25   :  { %343 = vmatprep.subr.mxu1 %v1879_v0  ;;  %1612 = vmatpush3.msra.mxu0 %v27_v55  ;;  %v107_v46 = vld [vmem:[%s2620_s1 + $0x90] sm:$0xff]  ;;  %v112_v47 = vld [vmem:[%s2620_s1 + $0xb8] sm:$0xff] }
  0x26   :  { %344 = vmatpush2.msra.mxu1 %v86_v53  ;;  %262 = vmatprep.mubr.f32.mxu0 %v90_v57  ;;  %v1495_v49 = vld [vmem:[%s2621_s4 + $0x50] sm:$0xff]  ;;  %v116_v51 = vld [vmem:[%s2620_s1 + $0xd8] sm:$0xff]  ;;  %v1493_v53 = vld [vmem:[%s2621_s4 + $0x40] sm:$0xff] }
  0x27   :  { %345 = vmatprep.subr.mxu1 %v1879_v0  ;;  %263 = vmatmul.mubr.f32.vlgmr.msra.gmra.mxu0 %v89_v58  ;;  %v111_v50 = vld [vmem:[%s2620_s1 + $0xb0] sm:$0xff]  ;;  %v1524_v52 = vld [vmem:[%s2621_s4 + $0xb8] sm:$0xff] }
  0x28   :  { %346 = vmatpush2.msra.mxu1 %v85_v56  ;;  %151 = vperm.xlu1 %1876, %v125_v60   ;;  %v115_v54 = vld [vmem:[%s2620_s1 + $0xd0] sm:$0xff]  ;;  %v120_v55 = vld [vmem:[%s2620_s1 + $0xf8] sm:$0xff]  ;;  %v1522_v56 = vld [vmem:[%s2621_s4 + $0xa8] sm:$0xff] }
  0x29   :  { %347 = vmatprep.subr.mxu1 %v1879_v0  ;;  %146 = vperm.xlu0 %1875, %v124_v61   ;;  %v1523_v57 = vld [vmem:[%s2621_s4 + $0xb0] sm:$0xff]  ;;  %v1521_v60 = vld [vmem:[%s2621_s4 + $0xa0] sm:$0xff]  ;;  %v1518_v61 = vld [vmem:[%s2621_s4 + $0x88] sm:$0xff] }
  0x2a   :  { %348 = vmatpush2.msra.mxu1 %v84_v59  ;;  %267 = vmatprep.mubr.f32.mxu0 %v94_v63  ;;  %v119_v58 = vld [vmem:[%s2620_s1 + $0xf0] sm:$0xff]  ;;  %v1520_v59 = vld [vmem:[%s2621_s4 + $0x98] sm:$0xff] }
  0x2b   :  { %349 = vmatprep.subr.mxu1 %v1879_v0  ;;  %268 = vmatmul.mubr.f32.gmra.mxu0 %v93_v1  ;;  %v1548_v63 = vld [vmem:[%s2621_s4 + $0xf8] sm:$0xff]  ;;  %v1517_v1 = vld [vmem:[%s2621_s4 + $0x80] sm:$0xff] }
  0x2c   :  { %350 = vmatpush2.msra.mxu1 %v83_v62  ;;  %141 = vperm.xlu1 %1876, %v123_v3   ;;  %v1519_v62 = vld [vmem:[%s2621_s4 + $0x90] sm:$0xff] }
  0x2d   :  { %351 = vmatprep.subr.mxu1 %v1879_v0  ;;  %136 = vperm.xlu0 %1875, %v122_v4   ;;  %v1547_v3 = vld [vmem:[%s2621_s4 + $0xf0] sm:$0xff]  ;;  %v1544_v4 = vld [vmem:[%s2621_s4 + $0xd8] sm:$0xff] }
  0x2e   :  { %352 = vmatpush2.msra.mxu1 %v82_v2  ;;  %272 = vmatprep.mubr.f32.mxu0 %v98_v6  ;;  %v1546_v2 = vld [vmem:[%s2621_s4 + $0xe8] sm:$0xff] }
  0x2f   :  { %353 = vmatprep.subr.mxu1 %v1879_v0  ;;  %1469 = vmatprep.mubr.msk.f32.mxu1 %vm169_vm1, %v92_v7  ;;  %v1542_v6 = vld [vmem:[%s2621_s4 + $0xc8] sm:$0xff]  ;;  %v1543_v7 = vld [vmem:[%s2621_s4 + $0xd0] sm:$0xff] }
  0x30   :  { %354 = vmatpush2.msra.mxu1 %v81_v5  ;;  %273 = vmatmul.mubr.f32.gmra.mxu0 %v97_v9  ;;  %v1545_v5 = vld [vmem:[%s2621_s4 + $0xe0] sm:$0xff] }
  0x31   :  { %355 = vmatprep.subr.mxu1 %v1879_v0  ;;  %461 = vperm.xlu0 %1875, %v423_v10   ;;  %v1541_v9 = vld [vmem:[%s2621_s4 + $0xc0] sm:$0xff]  ;;  %v1567_v10 = vld [vmem:[%s2621_s4 + $0x110] sm:$0xff] }
  0x32   :  { %356 = vmatpush2.msra.mxu1 %v80_v8  ;;  %131 = vperm.xlu1 %1876, %v121_v12   ;;  %v1565_v8 = vld [vmem:[%s2621_s4 + $0x100] sm:$0xff] }
  0x33   :  { %357 = vmatprep.subr.mxu1 %v1879_v0  ;;  %277 = vmatprep.mubr.f32.mxu0 %v102_v13  ;;  %v1569_v12 = vld [vmem:[%s2621_s4 + $0x120] sm:$0xff]  ;;  %v1568_v13 = vld [vmem:[%s2621_s4 + $0x118] sm:$0xff] }
  0x34   :  { %358 = vmatpush2.msra.mxu1 %v79_v11  ;;  %278 = vmatmul.mubr.f32.gmra.mxu0 %v101_v15  ;;  %v1566_v11 = vld [vmem:[%s2621_s4 + $0x108] sm:$0xff]  ;;  %v1390_v15 = vld [vmem:[%s2622_s5] sm:$0xff] }
  0x35   :  { %359 = vmatprep.subr.mxu1 %v1879_v0  ;;  %451 = vperm.xlu0 %1875, %v421_v16   ;;  %v1392_v16 = vld [vmem:[%s2622_s5 + $0x10] sm:$0xff] }
  0x36   :  { %360 = vmatpush2.msra.mxu1 %v78_v14  ;;  %456 = vperm.xlu1 %1876, %v422_v18   ;;  %v1391_v14 = vld [vmem:[%s2622_s5 + $0x8] sm:$0xff]  ;;  %v1393_v18 = vld [vmem:[%s2622_s5 + $0x18] sm:$0xff] }
  0x37   :  { %361 = vmatprep.subr.mxu1 %v1879_v0  ;;  %282 = vmatprep.mubr.f32.mxu0 %v106_v19  ;;  %v1571_v19 = vld [vmem:[%s2621_s4 + $0x130] sm:$0xff] }
  0x38   :  { %362 = vmatpush2.msra.mxu1 %v77_v17  ;;  %283 = vmatmul.mubr.f32.gmra.mxu0 %v105_v21  ;;  %v1570_v17 = vld [vmem:[%s2621_s4 + $0x128] sm:$0xff]  ;;  %v1572_v21 = vld [vmem:[%s2621_s4 + $0x138] sm:$0xff] }
  0x39   :  { %363 = vmatprep.subr.mxu1 %v1879_v0  ;;  %441 = vperm.xlu0 %1875, %v419_v22   ;;  %v1396_v22 = vld [vmem:[%s2622_s5 + $0x30] sm:$0xff] }
  0x3a   :  { %364 = vmatpush2.msra.mxu1 %v76_v20  ;;  %446 = vperm.xlu1 %1876, %v420_v24   ;;  %v1394_v20 = vld [vmem:[%s2622_s5 + $0x20] sm:$0xff]  ;;  %v1397_v24 = vld [vmem:[%s2622_s5 + $0x38] sm:$0xff] }
  0x3b   :  { %365 = vmatprep.subr.mxu1 %v1879_v0  ;;  %287 = vmatprep.mubr.f32.mxu0 %v110_v26  ;;  %v418_v0 = vld [vmem:[%s2621_s4 + $0x10] sm:$0xff] }
  0x3c   :  { %366 = vmatpush2.msra.mxu1 %v75_v23  ;;  %288 = vmatmul.mubr.f32.gmra.mxu0 %v109_v28  ;;  %v1395_v23 = vld [vmem:[%s2622_s5 + $0x28] sm:$0xff] }
  0x3d   :  { %368 = vmatmul.mubr.f32.vlgmr.msra.gmra.mxu1 %v91_v25  ;;  %431 = vperm.xlu0 %1875, %v417_v29   ;;  %v408_v25 = vld [vmem:[%s2623_s3] sm:$0xff] }
  0x3e   :  { %1470 = vmatprep.mubr.msk.f32.mxu1 %vm169_vm1, %v96_v27  ;;  %292 = vmatprep.mubr.f32.mxu0 %v114_v30 }
  0x3f   :  { %436 = vperm.xlu1 %1876, %v418_v0  }
  0x40   :  { %293 = vmatmul.mubr.f32.gmra.mxu0 %v113_v33 }
  0x41   :  { %373 = vmatmul.mubr.f32.gmra.mxu1 %v95_v31  ;;  %657 = vperm.xlu0 %1875, %v1500_v34  }
  0x42   :  { %1471 = vmatprep.mubr.msk.f32.mxu1 %vm169_vm1, %v100_v32  ;;  %297 = vmatprep.mubr.f32.mxu0 %v118_v35 }
  0x43   :  { %426 = vperm.xlu1 %1876, %v416_v36  }
  0x44   :  { %298 = vmatmul.mubr.f32.gmra.mxu0 %v117_v39 }
  0x45   :  { %378 = vmatmul.mubr.f32.gmra.mxu1 %v99_v37  ;;  %647 = vperm.xlu0 %1875, %v1498_v40  }
  0x46   :  { %1472 = vmatprep.mubr.msk.f32.mxu1 %vm169_vm1, %v104_v38  ;;  %1733 = vmatprep.mubr.msk.f32.mxu0 %vm464_vm2, %v408_v25 }
  0x47   :  { %652 = vperm.xlu1 %1876, %v1499_v41  }
  0x49   :  { %383 = vmatmul.mubr.f32.gmra.mxu1 %v103_v42  ;;  %637 = vperm.xlu0 %1875, %v1496_v44  }
  0x4a   :  { %1473 = vmatprep.mubr.msk.f32.mxu1 %vm169_vm1, %v108_v43 }
  0x4b   :  { %642 = vperm.xlu1 %1876, %v1497_v45  }
  0x4d   :  { %388 = vmatmul.mubr.f32.gmra.mxu1 %v107_v46  ;;  %627 = vperm.xlu0 %1875, %v1494_v48  }
  0x4e   :  { %1474 = vmatprep.mubr.msk.f32.mxu1 %vm169_vm1, %v112_v47 }
  0x4f   :  { %632 = vperm.xlu1 %1876, %v1495_v49  }
  0x51   :  { %393 = vmatmul.mubr.f32.gmra.mxu1 %v111_v50  ;;  %852 = vperm.xlu0 %1875, %v1524_v52  }
  0x52   :  { %1475 = vmatprep.mubr.msk.f32.mxu1 %vm169_vm1, %v116_v51 }
  0x53   :  { %622 = vperm.xlu1 %1876, %v1493_v53  }
  0x55   :  { %398 = vmatmul.mubr.f32.gmra.mxu1 %v115_v54  ;;  %842 = vperm.xlu0 %1875, %v1522_v56  }
  0x56   :  { %1476 = vmatprep.mubr.msk.f32.mxu1 %vm169_vm1, %v120_v55 }
  0x57   :  { %847 = vperm.xlu1 %1876, %v1523_v57  }
  0x59   :  { %403 = vmatmul.mubr.f32.gmra.mxu1 %v119_v58  ;;  %832 = vperm.xlu0 %1875, %v1520_v59  }
  0x5b   :  { %837 = vperm.xlu1 %1876, %v1521_v60  }
  0x5d   :  { %822 = vperm.xlu0 %1875, %v1518_v61  }
  0x5f   :  { %827 = vperm.xlu1 %1876, %v1519_v62  }
  0x61   :  { %1047 = vperm.xlu0 %1875, %v1548_v63  }
  0x63   :  { %817 = vperm.xlu1 %1876, %v1517_v1  }
  0x65   :  { %1037 = vperm.xlu0 %1875, %v1546_v2  }
  0x67   :  { %1042 = vperm.xlu1 %1876, %v1547_v3  }
  0x69   :  { %1027 = vperm.xlu0 %1875, %v1544_v4  }
  0x6b   :  { %1032 = vperm.xlu1 %1876, %v1545_v5  }
  0x6d   :  { %1017 = vperm.xlu0 %1875, %v1542_v6  }
  0x6f   :  { %1022 = vperm.xlu1 %1876, %v1543_v7  }
  0x71   :  { %1207 = vperm.xlu0 %1875, %v1565_v8  }
  0x73   :  { %1012 = vperm.xlu1 %1876, %v1541_v9  }
  0x75   :  { %1217 = vperm.xlu0 %1875, %v1567_v10  }
  0x77   :  { %1212 = vperm.xlu1 %1876, %v1566_v11  }
  0x79   :  { %1227 = vperm.xlu0 %1875, %v1569_v12  }
  0x7b   :  { %1222 = vperm.xlu1 %1876, %v1568_v13  }
  0x7d   :  { %1405 = vperm.xlu0 %1875, %v1391_v14  }
  0x7f   :  { %1400 = vperm.xlu1 %1876, %v1390_v15  }
  0x81   :  { %1410 = vperm.xlu0 %1875, %v1392_v16  }
  0x83   :  { %1232 = vperm.xlu1 %1876, %v1570_v17  }
  0x85   :  { %1415 = vperm.xlu0 %1875, %v1393_v18  }
  0x87   :  { %1237 = vperm.xlu1 %1876, %v1571_v19  }
  0x89   :  { %1420 = vperm.xlu0 %1875, %v1394_v20  }
  0x8b   :  { %1242 = vperm.xlu1 %1876, %v1572_v21  }
  0x8d   :  { %1430 = vperm.xlu0 %1875, %v1396_v22  }
  0x8f   :  { %1425 = vperm.xlu1 %1876, %v1395_v23  }
  0x93   :  { %1435 = vperm.xlu1 %1876, %v1397_v24  }
  0x97   :  { %v167_v50 = vpop.permute.xlu0 %166 }
  0x9c   :  { %v162_v58 = vpop.permute.xlu0 %161 }
  0x9d   :  { %v157_v53 = vpop.permute.xlu1 %156 }
  0xa3   :  { %v152_v62 = vpop.permute.xlu1 %151 }
  0xa4   :  { %v147_v8 = vpop.permute.xlu0 %146 }
  0xa7   :  { %v142_v12 = vpop.permute.xlu1 %141 }
  0xa8   :  { %v137_v19 = vpop.permute.xlu0 %136 }
  0xad   :  { %v132_v22 = vpop.permute.xlu1 %131 }
  0xe7   :  { %v1613_v26 = vpop.f32.mrf.mxu0 }
  0xe9   :  { %v1614_v27 = vpop.f32.mrf.mxu0 }
  0xea   :  { %v1615_v16 = vadd.f32 %v1614_v27, %v1613_v26  ;;  %v409_v26 = vld [vmem:[%s2623_s3 + $0x8] sm:$0xff]  ;;  %v410_v27 = vld [vmem:[%s2623_s3 + $0x10] sm:$0xff] }
  0xeb   :  { %v1616_v28 = vpop.f32.mrf.mxu0 }
  0xec   :  { %v265_v23 = vadd.f32 %v1615_v16, %v132_v22 }
  0xed   :  { %v1617_v29 = vpop.f32.mrf.mxu0 }
  0xee   :  { %v1618_v13 = vadd.f32 %v1617_v29, %v1616_v28  ;;  %v411_v28 = vld [vmem:[%s2623_s3 + $0x18] sm:$0xff]  ;;  %v412_v29 = vld [vmem:[%s2623_s3 + $0x20] sm:$0xff] }
  0xf0   :  { %v1619_v30 = vpop.f32.mrf.mxu0  ;;  %v270_v20 = vadd.f32 %v1618_v13, %v137_v19 }
  0xf2   :  { %v1620_v0 = vpop.f32.mrf.mxu0 }
  0xf3   :  { %v1621_v9 = vadd.f32 %v1620_v0, %v1619_v30  ;;  %v413_v30 = vld [vmem:[%s2623_s3 + $0x28] sm:$0xff]  ;;  %v414_v0 = vld [vmem:[%s2623_s3 + $0x30] sm:$0xff] }
  0xf4   :  { %v1622_v31 = vpop.f32.mrf.mxu0 }
  0xf5   :  { %v275_v17 = vadd.f32 %v1621_v9, %v142_v12  ;;  %v1491_v9 = vld [vmem:[%s2623_s3 + $0x70] sm:$0xff]  ;;  %v1509_v12 = vld [vmem:[%s2623_s3 + $0x80] sm:$0xff] }
  0xf6   :  { %v1623_v32 = vpop.f32.mrf.mxu0  ;;  %1789 = vmatprep.mubr.msk.f32.mxu1 %vm464_vm2, %v1509_v12 }
  0xf7   :  { %v1624_v5 = vadd.f32 %v1623_v32, %v1622_v31  ;;  %v415_v31 = vld [vmem:[%s2623_s3 + $0x38] sm:$0xff]  ;;  %v1485_v32 = vld [vmem:[%s2623_s3 + $0x40] sm:$0xff] }
  0xf8   :  { %v1625_v33 = vpop.f32.mrf.mxu0 }
  0xf9   :  { %v280_v14 = vadd.f32 %v1624_v5, %v147_v8  ;;  %v1488_v5 = vld [vmem:[%s2623_s3 + $0x58] sm:$0xff]  ;;  %v1490_v8 = vld [vmem:[%s2623_s3 + $0x68] sm:$0xff] }
  0xfa   :  { %v1626_v34 = vpop.f32.mrf.mxu0 }
  0xfb   :  { %v1627_v1 = vadd.f32 %v1626_v34, %v1625_v33 }
  0xfc   :  { %v1628_v36 = vpop.f32.mrf.mxu0 }
  0xfd   :  { %v2413_v35 = vpop.f32.mrf.mxu1  ;;  %v285_v10 = vadd.f32 %v1627_v1, %v152_v62 }
  0xfe   :  { %v1629_v39 = vpop.f32.mrf.mxu0  ;;  %v2442_v25 = vadd.f32 %v2413_v35, %v265_v23  ;;  %v462_v35 = vpop.permute.xlu0 %461 }
  0xff   :  { %v371_v37 = vpop.f32.mrf.mxu1  ;;  %v1630_v60 = vadd.f32 %v1629_v39, %v1628_v36 }
 0x100   :  { %v1631_v42 = vpop.f32.mrf.mxu0  ;;  %v457_v37 = vpop.permute.xlu1 %456 }
 0x101   :  { %v374_v38 = vpop.f32.mrf.mxu1  ;;  %v290_v6 = vadd.f32 %v1630_v60, %v157_v53 }
 0x102   :  { %v1632_v45 = vpop.f32.mrf.mxu0  ;;  %v2437_v24 = vadd.f32 %v374_v38, %v270_v20 }
 0x103   :  { %v376_v40 = vpop.f32.mrf.mxu1  ;;  %v1633_v57 = vadd.f32 %v1632_v45, %v1631_v42 }
 0x104   :  { %v1634_v48 = vpop.f32.mrf.mxu0  ;;  %v452_v40 = vpop.permute.xlu0 %451 }
 0x105   :  { %v379_v41 = vpop.f32.mrf.mxu1  ;;  %v295_v2 = vadd.f32 %v1633_v57, %v162_v58  ;;  %v447_v42 = vpop.permute.xlu1 %446 }
 0x106   :  { %v1635_v52 = vpop.f32.mrf.mxu0  ;;  %v2433_v21 = vadd.f32 %v379_v41, %v275_v17 }
 0x107   :  { %v381_v43 = vpop.f32.mrf.mxu1  ;;  %v1636_v55 = vadd.f32 %v1635_v52, %v1634_v48 }
 0x109   :  { %v384_v44 = vpop.f32.mrf.mxu1  ;;  %v300_v61 = vadd.f32 %v1636_v55, %v167_v50  ;;  %v437_v52 = vpop.permute.xlu1 %436 }
 0x10a   :  { %v2429_v18 = vadd.f32 %v384_v44, %v280_v14 }
 0x10b   :  { %v386_v46 = vpop.f32.mrf.mxu1 }
 0x10d   :  { %v389_v47 = vpop.f32.mrf.mxu1  ;;  %v427_v60 = vpop.permute.xlu1 %426 }
 0x10e   :  { %v2425_v15 = vadd.f32 %v389_v47, %v285_v10  ;;  %v1492_v10 = vld [vmem:[%s2623_s3 + $0x78] sm:$0xff] }
 0x10f   :  { %v391_v49 = vpop.f32.mrf.mxu1 }
 0x110   :  { %v442_v49 = vpop.permute.xlu0 %441 }
 0x111   :  { %v394_v51 = vpop.f32.mrf.mxu1  ;;  %v653_v19 = vpop.permute.xlu1 %652 }
 0x112   :  { %v2421_v11 = vadd.f32 %v394_v51, %v290_v6  ;;  %v1489_v6 = vld [vmem:[%s2623_s3 + $0x60] sm:$0xff] }
 0x113   :  { %v396_v54 = vpop.f32.mrf.mxu1 }
 0x114   :  { %v432_v57 = vpop.permute.xlu0 %431 }
 0x115   :  { %v399_v56 = vpop.f32.mrf.mxu1 }
 0x116   :  { %v2417_v7 = vadd.f32 %v399_v56, %v295_v2  ;;  %v1486_v2 = vld [vmem:[%s2623_s3 + $0x48] sm:$0xff] }
 0x117   :  { %v401_v59 = vpop.f32.mrf.mxu1 }
 0x118   :  { %v658_v16 = vpop.permute.xlu0 %657 }
 0x119   :  { %v404_v63 = vpop.f32.mrf.mxu1 }
 0x11a   :  { %v2415_v3 = vadd.f32 %v404_v63, %v300_v61 }
 0x11b   :  { %v406_v4 = vpop.f32.mrf.mxu1 }
 0x11c   :  { %1717 = vmatprep.subr.mxu0 %v2415_v3  ;;  %v1487_v4 = vld [vmem:[%s2623_s3 + $0x50] sm:$0xff]  ;;  %v648_v23 = vpop.permute.xlu0 %647 }
 0x11d   :  { %1718 = vmatpush3.msra.mxu0 %v2415_v3 }
 0x11e   :  { %1719 = vmatprep.subr.mxu0 %v2417_v7 }
 0x11f   :  { %1720 = vmatpush3.msra.mxu0 %v2417_v7 }
 0x120   :  { %1721 = vmatprep.subr.mxu0 %v2421_v11 }
 0x121   :  { %1722 = vmatpush3.msra.mxu0 %v2421_v11 }
 0x122   :  { %1723 = vmatprep.subr.mxu0 %v2425_v15 }
 0x123   :  { %1724 = vmatpush3.msra.mxu0 %v2425_v15 }
 0x124   :  { %1725 = vmatprep.subr.mxu0 %v2429_v18 }
 0x125   :  { %1726 = vmatpush3.msra.mxu0 %v2429_v18 }
 0x126   :  { %1727 = vmatprep.subr.mxu0 %v2433_v21 }
 0x127   :  { %1728 = vmatpush3.msra.mxu0 %v2433_v21 }
 0x128   :  { %1729 = vmatprep.subr.mxu0 %v2437_v24 }
 0x129   :  { %1730 = vmatpush3.msra.mxu0 %v2437_v24 }
 0x12a   :  { %1731 = vmatprep.subr.mxu0 %v2442_v25 }
 0x12b   :  { %1732 = vmatpush3.msra.mxu0 %v2442_v25 }
 0x12c   :  { %1734 = vmatmul.mubr.msk.f32.vlgmr.msra.gmra.mxu0 %vm464_vm2, %v409_v26 }
 0x12d   :  { %1736 = vmatprep.mubr.msk.f32.mxu0 %vm464_vm2, %v410_v27  ;;  %v643_v27 = vpop.permute.xlu1 %642 }
 0x130   :  { %1737 = vmatmul.mubr.msk.f32.gmra.mxu0 %vm464_vm2, %v411_v28 }
 0x131   :  { %1739 = vmatprep.mubr.msk.f32.mxu0 %vm464_vm2, %v412_v29 }
 0x134   :  { %1740 = vmatmul.mubr.msk.f32.gmra.mxu0 %vm464_vm2, %v413_v30 }
 0x135   :  { %1742 = vmatprep.mubr.msk.f32.mxu0 %vm464_vm2, %v414_v0 }
 0x138   :  { %1743 = vmatmul.mubr.msk.f32.gmra.mxu0 %vm464_vm2, %v415_v31 }
 0x139   :  { %1761 = vmatprep.mubr.msk.f32.mxu0 %vm464_vm2, %v1485_v32 }
 0x1ec   :  { %v1735_v33 = vpop.f32.mrf.mxu0 }
 0x1ed   :  { %v561_v58 = vadd.f32 %v1735_v33, %v432_v57  ;;  %v638_v33 = vpop.permute.xlu0 %637 }
 0x1ee   :  { %v555_v34 = vpop.f32.mrf.mxu0 }
 0x1ef   :  { %v556_v61 = vadd.f32 %v555_v34, %v427_v60  ;;  %v595_v63 = vmax.f32 %v561_v58, 0.0 }
 0x1f0   :  { %v1738_v36 = vpop.f32.mrf.mxu0 }
 0x1f1   :  { %v571_v53 = vadd.f32 %v1738_v36, %v442_v49  ;;  %v594_v1 = vmax.f32 %v556_v61, 0.0  ;;  %v633_v36 = vpop.permute.xlu1 %632  ;;  %v1510_v49 = vld [vmem:[%s2623_s3 + $0x88] sm:$0xff] }
 0x1f2   :  { %v565_v38 = vpop.f32.mrf.mxu0 }
 0x1f3   :  { %v566_v55 = vadd.f32 %v565_v38, %v437_v52  ;;  %v597_v59 = vmax.f32 %v571_v53, 0.0  ;;  %v1513_v52 = vld [vmem:[%s2623_s3 + $0xa0] sm:$0xff]  ;;  %v1514_v53 = vld [vmem:[%s2623_s3 + $0xa8] sm:$0xff] }
 0x1f4   :  { %v1741_v39 = vpop.f32.mrf.mxu0 }
 0x1f5   :  { %v581_v46 = vadd.f32 %v1741_v39, %v452_v40  ;;  %v596_v62 = vmax.f32 %v566_v55, 0.0  ;;  %v1516_v55 = vld [vmem:[%s2623_s3 + $0xb8] sm:$0xff] }
 0x1f6   :  { %v575_v41 = vpop.f32.mrf.mxu0 }
 0x1f7   :  { %v576_v50 = vadd.f32 %v575_v41, %v447_v42  ;;  %v599_v54 = vmax.f32 %v581_v46, 0.0  ;;  %v628_v41 = vpop.permute.xlu0 %627 }
 0x1f8   :  { %v1744_v43 = vpop.f32.mrf.mxu0 }
 0x1f9   :  { %v591_v44 = vadd.f32 %v1744_v43, %v462_v35  ;;  %v598_v56 = vmax.f32 %v576_v50, 0.0  ;;  %v1511_v50 = vld [vmem:[%s2623_s3 + $0x90] sm:$0xff] }
 0x1fa   :  { %v585_v45 = vpop.f32.mrf.mxu0 }
 0x1fb   :  { %v601_v47 = vmax.f32 %v591_v44, 0.0  ;;  %v586_v48 = vadd.f32 %v585_v45, %v457_v37  ;;  %v623_v44 = vpop.permute.xlu1 %622 }
 0x1fd   :  { %v600_v51 = vmax.f32 %v586_v48, 0.0  ;;  %1745 = vmatprep.subr.mxu0 %v601_v47 }
 0x1fe   :  { %1746 = vmatpush3.msra.mxu0 %v601_v47 }
 0x1ff   :  { %1747 = vmatprep.subr.mxu0 %v600_v51  ;;  %v848_v61 = vpop.permute.xlu1 %847 }
 0x200   :  { %1748 = vmatpush3.msra.mxu0 %v600_v51  ;;  %v1512_v51 = vld [vmem:[%s2623_s3 + $0x98] sm:$0xff] }
 0x201   :  { %1749 = vmatprep.subr.mxu0 %v599_v54 }
 0x202   :  { %1750 = vmatpush3.msra.mxu0 %v599_v54  ;;  %v1515_v54 = vld [vmem:[%s2623_s3 + $0xb0] sm:$0xff] }
 0x203   :  { %1751 = vmatprep.subr.mxu0 %v598_v56 }
 0x204   :  { %1752 = vmatpush3.msra.mxu0 %v598_v56  ;;  %v1533_v56 = vld [vmem:[%s2623_s3 + $0xc0] sm:$0xff] }
 0x205   :  { %1753 = vmatprep.subr.mxu0 %v597_v59 }
 0x206   :  { %1754 = vmatpush3.msra.mxu0 %v597_v59  ;;  %v853_v59 = vpop.permute.xlu0 %852 }
 0x207   :  { %1755 = vmatprep.subr.mxu0 %v596_v62 }
 0x208   :  { %1756 = vmatpush3.msra.mxu0 %v596_v62 }
 0x209   :  { %1757 = vmatprep.subr.mxu0 %v595_v63 }
 0x20a   :  { %1758 = vmatpush3.msra.mxu0 %v595_v63 }
 0x20b   :  { %1759 = vmatprep.subr.mxu0 %v594_v1 }
 0x20c   :  { %1760 = vmatpush3.msra.mxu0 %v594_v1  ;;  %v843_v1 = vpop.permute.xlu0 %842 }
 0x20d   :  { %1762 = vmatmul.mubr.msk.f32.vlgmr.msra.gmra.mxu0 %vm464_vm2, %v1486_v2 }
 0x20e   :  { %1764 = vmatprep.mubr.msk.f32.mxu0 %vm464_vm2, %v1487_v4  ;;  %v838_v4 = vpop.permute.xlu1 %837 }
 0x211   :  { %1765 = vmatmul.mubr.msk.f32.gmra.mxu0 %vm464_vm2, %v1488_v5 }
 0x212   :  { %1767 = vmatprep.mubr.msk.f32.mxu0 %vm464_vm2, %v1489_v6 }
 0x215   :  { %1768 = vmatmul.mubr.msk.f32.gmra.mxu0 %vm464_vm2, %v1490_v8 }
 0x216   :  { %1770 = vmatprep.mubr.msk.f32.mxu0 %vm464_vm2, %v1491_v9 }
 0x219   :  { %1771 = vmatmul.mubr.msk.f32.gmra.mxu0 %vm464_vm2, %v1492_v10 }
 0x21a   :  { %1817 = vmatprep.mubr.msk.f32.mxu0 %vm464_vm2, %v1533_v56 }
 0x2cd   :  { %v1763_v13 = vpop.f32.mrf.mxu0 }
 0x2ce   :  { %v756_v42 = vadd.f32 %v1763_v13, %v628_v41  ;;  %v833_v13 = vpop.permute.xlu0 %832  ;;  %v1559_v41 = vld [vmem:[%s2623_s3 + $0x110] sm:$0xff] }
 0x2cf   :  { %v750_v14 = vpop.f32.mrf.mxu0 }
 0x2d0   :  { %v751_v45 = vadd.f32 %v750_v14, %v623_v44  ;;  %v790_v47 = vmax.f32 %v756_v42, 0.0 }
 0x2d1   :  { %v1766_v17 = vpop.f32.mrf.mxu0 }
 0x2d2   :  { %v766_v37 = vadd.f32 %v1766_v17, %v638_v33  ;;  %v789_v48 = vmax.f32 %v751_v45, 0.0  ;;  %v828_v17 = vpop.permute.xlu1 %827  ;;  %v1534_v33 = vld [vmem:[%s2623_s3 + $0xc8] sm:$0xff] }
 0x2d3   :  { %v760_v20 = vpop.f32.mrf.mxu0 }
 0x2d4   :  { %v761_v39 = vadd.f32 %v760_v20, %v633_v36  ;;  %v792_v43 = vmax.f32 %v766_v37, 0.0  ;;  %v1537_v36 = vld [vmem:[%s2623_s3 + $0xe0] sm:$0xff]  ;;  %v1538_v37 = vld [vmem:[%s2623_s3 + $0xe8] sm:$0xff] }
 0x2d5   :  { %v1769_v22 = vpop.f32.mrf.mxu0 }
 0x2d6   :  { %v776_v0 = vadd.f32 %v1769_v22, %v648_v23  ;;  %v791_v46 = vmax.f32 %v761_v39, 0.0  ;;  %v1540_v39 = vld [vmem:[%s2623_s3 + $0xf8] sm:$0xff] }
 0x2d7   :  { %v770_v26 = vpop.f32.mrf.mxu0 }
 0x2d8   :  { %v771_v34 = vadd.f32 %v770_v26, %v643_v27  ;;  %v794_v38 = vmax.f32 %v776_v0, 0.0  ;;  %v823_v26 = vpop.permute.xlu0 %822 }
 0x2d9   :  { %v1772_v28 = vpop.f32.mrf.mxu0 }
 0x2da   :  { %v786_v29 = vadd.f32 %v1772_v28, %v658_v16  ;;  %v793_v40 = vmax.f32 %v771_v34, 0.0  ;;  %v1535_v34 = vld [vmem:[%s2623_s3 + $0xd0] sm:$0xff] }
 0x2db   :  { %v780_v30 = vpop.f32.mrf.mxu0 }
 0x2dc   :  { %v796_v31 = vmax.f32 %v786_v29, 0.0  ;;  %v781_v32 = vadd.f32 %v780_v30, %v653_v19  ;;  %v818_v29 = vpop.permute.xlu1 %817  ;;  %v1048_v44 = vpop.permute.xlu0 %1047 }
 0x2de   :  { %v795_v35 = vmax.f32 %v781_v32, 0.0  ;;  %1773 = vmatprep.subr.mxu1 %v796_v31 }
 0x2df   :  { %1774 = vmatpush3.msra.mxu1 %v796_v31 }
 0x2e0   :  { %1775 = vmatprep.subr.mxu1 %v795_v35 }
 0x2e1   :  { %1776 = vmatpush3.msra.mxu1 %v795_v35  ;;  %v1536_v35 = vld [vmem:[%s2623_s3 + $0xd8] sm:$0xff] }
 0x2e2   :  { %1777 = vmatprep.subr.mxu1 %v794_v38 }
 0x2e3   :  { %1778 = vmatpush3.msra.mxu1 %v794_v38  ;;  %v1539_v38 = vld [vmem:[%s2623_s3 + $0xf0] sm:$0xff] }
 0x2e4   :  { %1779 = vmatprep.subr.mxu1 %v793_v40 }
 0x2e5   :  { %1780 = vmatpush3.msra.mxu1 %v793_v40  ;;  %v1557_v40 = vld [vmem:[%s2623_s3 + $0x100] sm:$0xff] }
 0x2e6   :  { %1781 = vmatprep.subr.mxu1 %v792_v43 }
 0x2e7   :  { %1782 = vmatpush3.msra.mxu1 %v792_v43 }
 0x2e8   :  { %1783 = vmatprep.subr.mxu1 %v791_v46 }
 0x2e9   :  { %1784 = vmatpush3.msra.mxu1 %v791_v46  ;;  %v1043_v46 = vpop.permute.xlu1 %1042 }
 0x2ea   :  { %1785 = vmatprep.subr.mxu1 %v790_v47 }
 0x2eb   :  { %1786 = vmatpush3.msra.mxu1 %v790_v47 }
 0x2ec   :  { %1787 = vmatprep.subr.mxu1 %v789_v48 }
 0x2ed   :  { %1788 = vmatpush3.msra.mxu1 %v789_v48 }
 0x2ee   :  { %1790 = vmatmul.mubr.msk.f32.vlgmr.msra.gmra.mxu1 %vm464_vm2, %v1510_v49  ;;  %v1038_v49 = vpop.permute.xlu0 %1037 }
 0x2ef   :  { %1792 = vmatprep.mubr.msk.f32.mxu1 %vm464_vm2, %v1511_v50 }
 0x2f2   :  { %1793 = vmatmul.mubr.msk.f32.gmra.mxu1 %vm464_vm2, %v1512_v51  ;;  %v1033_v51 = vpop.permute.xlu1 %1032 }
 0x2f3   :  { %1795 = vmatprep.mubr.msk.f32.mxu1 %vm464_vm2, %v1513_v52 }
 0x2f6   :  { %1796 = vmatmul.mubr.msk.f32.gmra.mxu1 %vm464_vm2, %v1514_v53 }
 0x2f7   :  { %1798 = vmatprep.mubr.msk.f32.mxu1 %vm464_vm2, %v1515_v54 }
 0x2fa   :  { %1799 = vmatmul.mubr.msk.f32.gmra.mxu1 %vm464_vm2, %v1516_v55 }
 0x2fb   :  { %1848 = vmatprep.mubr.msk.f32.mxu1 %vm464_vm2, %v1559_v41 }
 0x3ae   :  { %v1791_v57 = vpop.f32.mrf.mxu1 }
 0x3af   :  { %v951_v27 = vadd.f32 %v1791_v57, %v823_v26 }
 0x3b0   :  { %v945_v58 = vpop.f32.mrf.mxu1 }
 0x3b1   :  { %v946_v30 = vadd.f32 %v945_v58, %v818_v29  ;;  %v985_v31 = vmax.f32 %v951_v27, 0.0  ;;  %v1028_v58 = vpop.permute.xlu0 %1027 }
 0x3b2   :  { %v1794_v60 = vpop.f32.mrf.mxu1 }
 0x3b3   :  { %v961_v19 = vadd.f32 %v1794_v60, %v833_v13  ;;  %v984_v32 = vmax.f32 %v946_v30, 0.0 }
 0x3b4   :  { %v955_v62 = vpop.f32.mrf.mxu1 }
 0x3b5   :  { %v956_v22 = vadd.f32 %v955_v62, %v828_v17  ;;  %v987_v28 = vmax.f32 %v961_v19, 0.0  ;;  %v1561_v17 = vld [vmem:[%s2623_s3 + $0x120] sm:$0xff]  ;;  %v1562_v19 = vld [vmem:[%s2623_s3 + $0x128] sm:$0xff] }
 0x3b6   :  { %v1797_v63 = vpop.f32.mrf.mxu1 }
 0x3b7   :  { %v971_v9 = vadd.f32 %v1797_v63, %v843_v1  ;;  %v986_v0 = vmax.f32 %v956_v22, 0.0  ;;  %v1564_v22 = vld [vmem:[%s2623_s3 + $0x138] sm:$0xff] }
 0x3b8   :  { %v965_v2 = vpop.f32.mrf.mxu1 }
 0x3b9   :  { %v966_v14 = vadd.f32 %v965_v2, %v838_v4  ;;  %v989_v20 = vmax.f32 %v971_v9, 0.0  ;;  %v1018_v4 = vpop.permute.xlu0 %1017 }
 0x3ba   :  { %v1800_v5 = vpop.f32.mrf.mxu1 }
 0x3bb   :  { %v981_v6 = vadd.f32 %v1800_v5, %v853_v59  ;;  %v988_v23 = vmax.f32 %v966_v14, 0.0  ;;  %v1558_v14 = vld [vmem:[%s2623_s3 + $0x108] sm:$0xff] }
 0x3bc   :  { %v975_v8 = vpop.f32.mrf.mxu1 }
 0x3bd   :  { %v991_v10 = vmax.f32 %v981_v6, 0.0  ;;  %v976_v12 = vadd.f32 %v975_v8, %v848_v61  ;;  %v1023_v61 = vpop.permute.xlu1 %1022 }
 0x3bf   :  { %v990_v16 = vmax.f32 %v976_v12, 0.0  ;;  %1801 = vmatprep.subr.mxu0 %v991_v10 }
 0x3c0   :  { %1802 = vmatpush3.msra.mxu0 %v991_v10 }
 0x3c1   :  { %1803 = vmatprep.subr.mxu0 %v990_v16  ;;  %v1013_v8 = vpop.permute.xlu1 %1012 }
 0x3c2   :  { %1804 = vmatpush3.msra.mxu0 %v990_v16  ;;  %v1560_v16 = vld [vmem:[%s2623_s3 + $0x118] sm:$0xff] }
 0x3c3   :  { %1805 = vmatprep.subr.mxu0 %v989_v20 }
 0x3c4   :  { %1806 = vmatpush3.msra.mxu0 %v989_v20  ;;  %v1563_v20 = vld [vmem:[%s2623_s3 + $0x130] sm:$0xff] }
 0x3c5   :  { %1807 = vmatprep.subr.mxu0 %v988_v23  ;;  %v1213_v26 = vpop.permute.xlu1 %1212 }
 0x3c6   :  { %1808 = vmatpush3.msra.mxu0 %v988_v23  ;;  %v1208_v23 = vpop.permute.xlu0 %1207 }
 0x3c7   :  { %1809 = vmatprep.subr.mxu0 %v987_v28 }
 0x3c8   :  { %1810 = vmatpush3.msra.mxu0 %v987_v28 }
 0x3c9   :  { %1811 = vmatprep.subr.mxu0 %v986_v0  ;;  %v1223_v28 = vpop.permute.xlu1 %1222 }
 0x3ca   :  { %1812 = vmatpush3.msra.mxu0 %v986_v0  ;;  %v1218_v27 = vpop.permute.xlu0 %1217 }
 0x3cb   :  { %1813 = vmatprep.subr.mxu0 %v985_v31 }
 0x3cc   :  { %1814 = vmatpush3.msra.mxu0 %v985_v31 }
 0x3cd   :  { %1815 = vmatprep.subr.mxu0 %v984_v32  ;;  %v1401_v30 = vpop.permute.xlu1 %1400 }
 0x3ce   :  { %1816 = vmatpush3.msra.mxu0 %v984_v32  ;;  %v1228_v29 = vpop.permute.xlu0 %1227 }
 0x3cf   :  { %1818 = vmatmul.mubr.msk.f32.vlgmr.msra.gmra.mxu0 %vm464_vm2, %v1534_v33 }
 0x3d0   :  { %1820 = vmatprep.mubr.msk.f32.mxu0 %vm464_vm2, %v1535_v34 }
 0x3d1   :  { %v1233_v31 = vpop.permute.xlu1 %1232 }
 0x3d2   :  { %v1406_v0 = vpop.permute.xlu0 %1405 }
 0x3d3   :  { %1821 = vmatmul.mubr.msk.f32.gmra.mxu0 %vm464_vm2, %v1536_v35 }
 0x3d4   :  { %1823 = vmatprep.mubr.msk.f32.mxu0 %vm464_vm2, %v1537_v36 }
 0x3d5   :  { %v1238_v35 = vpop.permute.xlu1 %1237 }
 0x3d6   :  { %v1411_v32 = vpop.permute.xlu0 %1410 }
 0x3d7   :  { %1824 = vmatmul.mubr.msk.f32.gmra.mxu0 %vm464_vm2, %v1538_v37 }
 0x3d8   :  { %1826 = vmatprep.mubr.msk.f32.mxu0 %vm464_vm2, %v1539_v38 }
 0x3db   :  { %1827 = vmatmul.mubr.msk.f32.gmra.mxu0 %vm464_vm2, %v1540_v39 }
 0x3dc   :  { %1845 = vmatprep.mubr.msk.f32.mxu0 %vm464_vm2, %v1557_v40 }
 0x48f   :  { %v1819_v42 = vpop.f32.mrf.mxu0 }
 0x490   :  { %v1146_v5 = vadd.f32 %v1819_v42, %v1018_v4 }
 0x491   :  { %v1140_v43 = vpop.f32.mrf.mxu0 }
 0x492   :  { %v1141_v9 = vadd.f32 %v1140_v43, %v1013_v8  ;;  %v1180_v12 = vmax.f32 %v1146_v5, 0.0 }
 0x493   :  { %v1822_v45 = vpop.f32.mrf.mxu0 }
 0x494   :  { %v1156_v62 = vadd.f32 %v1822_v45, %v1028_v58  ;;  %v1179_v13 = vmax.f32 %v1141_v9, 0.0 }
 0x495   :  { %v1150_v47 = vpop.f32.mrf.mxu0 }
 0x496   :  { %v1151_v1 = vadd.f32 %v1150_v47, %v1023_v61  ;;  %v1182_v6 = vmax.f32 %v1156_v62, 0.0 }
 0x497   :  { %v1825_v48 = vpop.f32.mrf.mxu0 }
 0x498   :  { %v1166_v55 = vadd.f32 %v1825_v48, %v1038_v49  ;;  %v1181_v10 = vmax.f32 %v1151_v1, 0.0  ;;  %v1416_v48 = vpop.permute.xlu0 %1415 }
 0x499   :  { %v1160_v50 = vpop.f32.mrf.mxu0 }
 0x49a   :  { %v1161_v59 = vadd.f32 %v1160_v50, %v1033_v51  ;;  %v1184_v63 = vmax.f32 %v1166_v55, 0.0 }
 0x49b   :  { %v1828_v52 = vpop.f32.mrf.mxu0 }
 0x49c   :  { %v1176_v53 = vadd.f32 %v1828_v52, %v1048_v44  ;;  %v1183_v2 = vmax.f32 %v1161_v59, 0.0 }
 0x49d   :  { %v1170_v54 = vpop.f32.mrf.mxu0 }
 0x49e   :  { %v1186_v56 = vmax.f32 %v1176_v53, 0.0  ;;  %v1171_v57 = vadd.f32 %v1170_v54, %v1043_v46  ;;  %v1243_v53 = vpop.permute.xlu1 %1242 }
 0x4a0   :  { %v1185_v60 = vmax.f32 %v1171_v57, 0.0  ;;  %1829 = vmatprep.subr.mxu0 %v1186_v56  ;;  %1857 = vmatprep.subr.mxu1 %v1186_v56 }
 0x4a1   :  { %1830 = vmatpush3.msra.mxu0 %v1186_v56  ;;  %1865 = vmatpush3.msra.mxu1 %v1186_v56 }
 0x4a2   :  { %1831 = vmatprep.subr.mxu0 %v1185_v60  ;;  %1858 = vmatprep.subr.mxu1 %v1185_v60  ;;  %v1426_v8 = vpop.permute.xlu1 %1425 }
 0x4a3   :  { %1832 = vmatpush3.msra.mxu0 %v1185_v60  ;;  %1866 = vmatpush3.msra.mxu1 %v1185_v60 }
 0x4a4   :  { %1833 = vmatprep.subr.mxu0 %v1184_v63  ;;  %1859 = vmatprep.subr.mxu1 %v1184_v63 }
 0x4a5   :  { %1834 = vmatpush3.msra.mxu0 %v1184_v63  ;;  %1867 = vmatpush3.msra.mxu1 %v1184_v63 }
 0x4a6   :  { %1835 = vmatprep.subr.mxu0 %v1183_v2  ;;  %1860 = vmatprep.subr.mxu1 %v1183_v2 }
 0x4a7   :  { %1836 = vmatpush3.msra.mxu0 %v1183_v2  ;;  %1868 = vmatpush3.msra.mxu1 %v1183_v2  ;;  %v1421_v2 = vpop.permute.xlu0 %1420 }
 0x4a8   :  { %1837 = vmatprep.subr.mxu0 %v1182_v6  ;;  %1861 = vmatprep.subr.mxu1 %v1182_v6 }
 0x4a9   :  { %1838 = vmatpush3.msra.mxu0 %v1182_v6  ;;  %1869 = vmatpush3.msra.mxu1 %v1182_v6 }
 0x4aa   :  { %1839 = vmatprep.subr.mxu0 %v1181_v10  ;;  %1862 = vmatprep.subr.mxu1 %v1181_v10 }
 0x4ab   :  { %1840 = vmatpush3.msra.mxu0 %v1181_v10  ;;  %1870 = vmatpush3.msra.mxu1 %v1181_v10 }
 0x4ac   :  { %1841 = vmatprep.subr.mxu0 %v1180_v12  ;;  %1863 = vmatprep.subr.mxu1 %v1180_v12 }
 0x4ad   :  { %1842 = vmatpush3.msra.mxu0 %v1180_v12  ;;  %1871 = vmatpush3.msra.mxu1 %v1180_v12 }
 0x4ae   :  { %1843 = vmatprep.subr.mxu0 %v1179_v13  ;;  %1864 = vmatprep.subr.mxu1 %v1179_v13 }
 0x4af   :  { %1844 = vmatpush3.msra.mxu0 %v1179_v13  ;;  %1872 = vmatpush3.msra.mxu1 %v1179_v13 }
 0x4b0   :  { %1846 = vmatmul.mubr.msk.f32.vlgmr.msra.gmra.mxu0 %vm464_vm2, %v1558_v14  ;;  %1849 = vmatmul.mubr.msk.f32.vlgmr.msra.gmra.mxu1 %vm464_vm2, %v1560_v16 }
 0x4b1   :  { %1851 = vmatprep.mubr.msk.f32.mxu1 %vm464_vm2, %v1561_v17  ;;  %v1431_v17 = vpop.permute.xlu0 %1430 }
 0x4b4   :  { %1852 = vmatmul.mubr.msk.f32.gmra.mxu1 %vm464_vm2, %v1562_v19 }
 0x4b5   :  { %1854 = vmatprep.mubr.msk.f32.mxu1 %vm464_vm2, %v1563_v20 }
 0x4b8   :  { %1855 = vmatmul.mubr.msk.f32.gmra.mxu1 %vm464_vm2, %v1564_v22  ;;  %v1436_v22 = vpop.permute.xlu1 %1435 }
 0x570   :  { %v1847_v33 = vpop.f32.mrf.mxu0  ;;  %v1850_v34 = vpop.f32.mrf.mxu1 }
 0x571   :  { %v1341_v36 = vadd.f32 %v1847_v33, %v1213_v26  ;;  %v1351_v37 = vadd.f32 %v1850_v34, %v1223_v28 }
 0x572   :  { %v1335_v38 = vpop.f32.mrf.mxu0  ;;  %v1345_v39 = vpop.f32.mrf.mxu1 }
 0x573   :  { %v1375_v40 = vmax.f32 %v1341_v36, 0.0  ;;  %v1336_v41 = vadd.f32 %v1335_v38, %v1208_v23  ;;  %v1346_v42 = vadd.f32 %v1345_v39, %v1218_v27  ;;  %v1377_v43 = vmax.f32 %v1351_v37, 0.0 }
 0x574   :  { %v1853_v44 = vpop.f32.mrf.mxu1 }
 0x575   :  { %v1383_v45 = vadd.f32 %v1375_v40, %v2437_v24  ;;  %v1374_v46 = vmax.f32 %v1336_v41, 0.0  ;;  %v1376_v47 = vmax.f32 %v1346_v42, 0.0  ;;  %v1361_v49 = vadd.f32 %v1853_v44, %v1233_v31 }
 0x576   :  { %v1355_v50 = vpop.f32.mrf.mxu1  ;;  %v1385_v54 = vadd.f32 %v1377_v43, %v2429_v18 }
 0x577   :  { %v1382_v51 = vadd.f32 %v1374_v46, %v2442_v25  ;;  %v1384_v52 = vadd.f32 %v1376_v47, %v2433_v21  ;;  %v1356_v55 = vadd.f32 %v1355_v50, %v1228_v29  ;;  %v1439_v57 = vmul.f32 %v1406_v0, %v1383_v45 }
 0x578   :  { %v1856_v56 = vpop.f32.mrf.mxu1  ;;  %v1379_v59 = vmax.f32 %v1361_v49, 0.0  ;;  %v1441_v4 = vmul.f32 %v1416_v48, %v1385_v54 }
 0x579   :  { %v1438_v58 = vmul.f32 %v1401_v30, %v1382_v51  ;;  %v1371_v60 = vadd.f32 %v1856_v56, %v1243_v53  ;;  %v1378_v61 = vmax.f32 %v1356_v55, 0.0  ;;  %v1440_v63 = vmul.f32 %v1411_v32, %v1384_v52 }
 0x57a   :  { %v1365_v24 = vpop.f32.mrf.mxu1  ;;  %v1387_v21 = vadd.f32 %v1379_v59, %v2421_v11 }
 0x57b   :  { %v1446_v62 = vadd.f32 %v1439_v57, %v1438_v58  ;;  %v1366_v1 = vadd.f32 %v1365_v24, %v1238_v35  ;;  %v1386_v25 = vadd.f32 %v1378_v61, %v2425_v15  ;;  %v1381_v6 = vmax.f32 %v1371_v60, 0.0 }
 0x57c   :  { %v1443_v13 = vmul.f32 %v1426_v8, %v1387_v21 }
 0x57d   :  { %v1447_v5 = vadd.f32 %v1446_v62, %v1440_v63  ;;  %v1380_v18 = vmax.f32 %v1366_v1, 0.0  ;;  %v1442_v9 = vmul.f32 %v1421_v2, %v1386_v25  ;;  %v1389_v16 = vadd.f32 %v1381_v6, %v2415_v3 }
 0x57f   :  { %v1448_v10 = vadd.f32 %v1447_v5, %v1441_v4  ;;  %v1388_v12 = vadd.f32 %v1380_v18, %v2417_v7  ;;  %v1445_v23 = vmul.f32 %v1436_v22, %v1389_v16  ;;  %v1460_v7 = vstv %s2624_s6 }
 0x581   :  { %v1449_v14 = vadd.f32 %v1448_v10, %v1442_v9  ;;  %v1444_v19 = vmul.f32 %v1431_v17, %v1388_v12 }
 0x583   :  { %v1450_v20 = vadd.f32 %v1449_v14, %v1443_v13 }
 0x585   :  { %v1451_v15 = vadd.f32 %v1450_v20, %v1444_v19 }
 0x587   :  { %v1452_v26 = vadd.f32 %v1451_v15, %v1445_v23 }
 0x589   :  { %v1453_v27 = vrot.slane %v1452_v26, 4 }
 0x58b   :  { %v1454_v11 = vadd.f32 %v1453_v27, %v1452_v26 }
 0x58d   :  { %v1455_v28 = vrot.slane %v1454_v11, 2 }
 0x58f   :  { %v1456_v29 = vadd.f32 %v1455_v28, %v1454_v11 }
 0x591   :  { %v1457_v30 = vrot.slane %v1456_v29, 1 }
 0x593   :  { %v1458_v0 = vadd.f32 %v1457_v30, %v1456_v29 }
 0x595   :  { %v1461_v31 = vadd.f32 %v1460_v7, %v1458_v0 }
 0x597   :  { %1877 = vtanh.f32 %v1461_v31 }
 0x5a4   :  { %v1878_v3 = vpop.eup %1877 }
 0x5a5   :  { %1463 = vst [vmem:[%s2625_s7] sm:$0x1] %v1878_v3 }

</bundles_post_ra>
